<compile_context>
chip_gen: v7x
topology: tpu7x:2x2x1
jax: 0.10.0
libtpu: 0.0.40
codegen_flags: <defaults>
</compile_context>

<pallas_src>
import functools

import jax
import jax.numpy as jnp
from jax.experimental import pallas as pl
from jax.experimental.pallas import tpu as pltpu


# --------------------------------------------------------------------------- #
# Kernels
# --------------------------------------------------------------------------- #

def _supcon_resident_kernel(contrast_ref, lab_col_ref, lab_row_ref, col_idx_ref,
                            out_ref, *, inv_temp: float):
    """One anchor-row tile against the full resident (B, D) contrast block."""
    i = pl.program_id(0)
    tm = lab_col_ref.shape[0]

    c = contrast_ref[...]                                    # (B, D) resident features

    # Anchor rows are a slice of the resident contrast block: features are read
    # from HBM exactly once and there is no second (TM, D) input stream.
    row_start = pl.multiple_of(i * tm, tm)
    a = contrast_ref[pl.ds(row_start, tm), :]                # (TM, D)
    # Fold 1/T into the small operand (multiply in f32; bf16 rounds once).
    a_scaled = (a.astype(jnp.float32) * inv_temp).astype(c.dtype)

    # sim[r, k] = <anchor_r, contrast_k> / T  (MXU, f32 accumulation, no transpose)
    sim = jax.lax.dot_general(
        a_scaled, c,
        dimension_numbers=(((1,), (1,)), ((), ())),
        preferred_element_type=jnp.float32)                  # (TM, B) f32

    # Masks from one broadcast compare each (no (TM, B) iotas materialized).
    row_ids = jax.lax.broadcasted_iota(jnp.int32, (tm, 1), 0) + i * tm   # (TM, 1)
    offdiag = row_ids != col_idx_ref[...]                                # (TM, B) bool
    posf = jnp.where((lab_col_ref[...] == lab_row_ref[...]) & offdiag,
                     1.0, 0.0)                                           # (TM, B) f32

    # Positive-pair statistics on the UNSHIFTED sim (independent of logits).
    mask_pos_raw = jnp.sum(posf, axis=1, keepdims=True)                  # (TM, 1)
    sum_pos_sim = jnp.sum(posf * sim, axis=1, keepdims=True)             # (TM, 1)

    # Softmax denominator over non-self entries (row-max shifted, as reference).
    logits_max = jnp.max(sim, axis=1, keepdims=True)                     # (TM, 1)
    exp_logits = jnp.where(offdiag, jnp.exp(sim - logits_max), 0.0)      # (TM, B)
    log_denom = jnp.log(jnp.sum(exp_logits, axis=1, keepdims=True) + 1e-6)

    # sum(mask*log_prob) = sum(mask*sim) - sum(mask)*(logits_max + log_denom)
    mask_pos = jnp.where(mask_pos_raw < 1e-6, 1.0, mask_pos_raw)
    mean_log_prob_pos = (sum_pos_sim
                         - mask_pos_raw * (logits_max + log_denom)) / mask_pos

    out_ref[0, 0] = jnp.sum(mean_log_prob_pos)


def _supcon_tiled_kernel(anchor_ref, contrast_ref, lab_col_ref, lab_row_ref,
                         col_idx_ref, out_ref, m_sc, l_sc, pc_sc, ps_sc,
                         *, inv_temp: float):
    """(TM, D) anchor tile vs. streamed (TK, D) contrast column tiles; online LSE."""
    i = pl.program_id(0)
    k = pl.program_id(1)
    tm = anchor_ref.shape[0]

    @pl.when(k == 0)
    def _():
        m_sc[...] = jnp.full_like(m_sc, -jnp.inf)
        l_sc[...] = jnp.zeros_like(l_sc)
        pc_sc[...] = jnp.zeros_like(pc_sc)
        ps_sc[...] = jnp.zeros_like(ps_sc)

    a = anchor_ref[...]                                      # (TM, D)
    a_scaled = (a.astype(jnp.float32) * inv_temp).astype(a.dtype)
    sim = jax.lax.dot_general(
        a_scaled, contrast_ref[...],
        dimension_numbers=(((1,), (1,)), ((), ())),
        preferred_element_type=jnp.float32)                  # (TM, TK) f32

    row_ids = jax.lax.broadcasted_iota(jnp.int32, (tm, 1), 0) + i * tm   # (TM, 1)
    offdiag = row_ids != col_idx_ref[...]                                # (TM, TK)
    posf = jnp.where((lab_col_ref[...] == lab_row_ref[...]) & offdiag, 1.0, 0.0)

    # Positive-pair sums are linear in sim -> accumulate unshifted.
    pc_sc[...] += jnp.sum(posf, axis=1, keepdims=True)
    ps_sc[...] += jnp.sum(posf * sim, axis=1, keepdims=True)

    # Online log-sum-exp for the non-self softmax denominator.
    m_prev = m_sc[...]
    m_new = jnp.maximum(m_prev, jnp.max(sim, axis=1, keepdims=True))
    exp_logits = jnp.where(offdiag, jnp.exp(sim - m_new), 0.0)
    l_sc[...] = (l_sc[...] * jnp.exp(m_prev - m_new)
                 + jnp.sum(exp_logits, axis=1, keepdims=True))
    m_sc[...] = m_new

    @pl.when(k == pl.num_programs(1) - 1)
    def _():
        log_denom = jnp.log(l_sc[...] + 1e-6)
        mask_pos_raw = pc_sc[...]
        mask_pos = jnp.where(mask_pos_raw < 1e-6, 1.0, mask_pos_raw)
        mean_log_prob_pos = (ps_sc[...]
                             - mask_pos_raw * (m_sc[...] + log_denom)) / mask_pos
        out_ref[0, 0] = jnp.sum(mean_log_prob_pos)


# --------------------------------------------------------------------------- #
# Wrapper: tiling / VMEM decisions
# --------------------------------------------------------------------------- #

def _device_kind() -> str:
    try:
        return jax.devices()[0].device_kind.lower()
    except Exception:
        return ""


def _vmem_limit_bytes(kind: str) -> int:
    # Raise the scoped-VMEM ceiling above the 16/32 MiB defaults, with
    # per-generation headroom (v7x: 64 MiB physical/TC; v5e/v6e: 128 MiB).
    if "v7" in kind:
        return 56 * 1024 * 1024
    return 100 * 1024 * 1024


def _max_row_tile(kind: str) -> int:
    if "v6" in kind or "v7" in kind:
        return 512          # 2x256 MXU; larger tiles amortize the ~0.35us/step cost
    return 256              # v5e (4x128 MXU, small scoped VMEM) and unknown chips


def _resident_vmem_estimate(b: int, d: int, tm: int, feat_bytes: int) -> int:
    resident = b * d * feat_bytes        # contrast block (single-buffered)
    live = 6 * tm * b * 4                # live (TM, B) f32/bool temporaries
    return resident + live + (64 << 10)


def _divisor_row_tiles(b: int, cap: int):
    cands = [t for t in range(min(cap, b), 7, -1)
             if b % t == 0 and (t % 8 == 0 or t == b)]
    return cands or [b]


def _default_tiled_tiles(b: int, cap: int):
    tk = next((t for t in range((min(1024, b) // 128) * 128, 0, -128)
               if b % t == 0), b)
    tm = next((t for t in range(min(cap, 256, b), 7, -1)
               if b % t == 0 and t % 8 == 0), b)
    return tm, tk


def supcon_loss(features, labels, temperature=0.07, contrast_mode='all',
                base_temperature=0.07, *, force_tiled=False,
                row_tile=None, col_tile=None):
    """SupConLoss forward. features: (B, D) f32/bf16, labels: (B,) ints -> scalar."""
    del contrast_mode  # forward matches the flattened n_views == 1 case
    B, D = features.shape
    if labels.shape[0] != B:
        raise ValueError('Num of labels does not match num of features')

    labels = labels.astype(jnp.int32)
    lab_col = labels.reshape(B, 1)
    lab_row = labels.reshape(1, B)
    col_idx = jnp.arange(B, dtype=jnp.int32).reshape(1, B)

    kind = _device_kind()
    vmem_limit = _vmem_limit_bytes(kind)
    budget = int(0.6 * vmem_limit)
    cap = _max_row_tile(kind)
    feat_bytes = features.dtype.itemsize
    inv_temp = 1.0 / float(temperature)

    cost = pl.CostEstimate(
        flops=2 * B * B * D,
        transcendentals=B * B,
        bytes_accessed=B * D * feat_bytes + 3 * B * 4 + 8,
    )

    use_tiled = bool(force_tiled)
    tm = None
    if not use_tiled:
        cands = [row_tile] if row_tile is not None else _divisor_row_tiles(B, cap)
        tm = next((t for t in cands
                   if _resident_vmem_estimate(B, D, t, feat_bytes) <= budget), None)
        if tm is None:
            if B % 128 == 0:
                use_tiled = True      # resident (B, D) block would blow VMEM
            else:
                # TODO(synk): pad B up to a multiple of 128 so huge, oddly shaped
                # batches can also take the bounded-VMEM column-tiled path.
                tm = cands[-1]

    if use_tiled:
        tm_d, tk_d = _default_tiled_tiles(B, cap)
        tm = row_tile if row_tile is not None else tm_d
        tk = col_tile if col_tile is not None else tk_d
        if B % tm != 0 or B % tk != 0:
            raise ValueError(f'row_tile/col_tile must divide batch size {B}')
        grid = (B // tm, B // tk)
        kernel = functools.partial(_supcon_tiled_kernel, inv_temp=inv_temp)
        partials = pl.pallas_call(
            kernel,
            out_shape=jax.ShapeDtypeStruct((grid[0], 1), jnp.float32),
            grid=grid,
            in_specs=[
                pl.BlockSpec((tm, D), lambda i, k: (i, 0)),    # anchor row tile
                pl.BlockSpec((tk, D), lambda i, k: (k, 0)),    # contrast column tile
                pl.BlockSpec((tm, 1), lambda i, k: (i, 0)),    # anchor labels
                pl.BlockSpec((1, tk), lambda i, k: (0, k)),    # contrast labels
                pl.BlockSpec((1, tk), lambda i, k: (0, k)),    # global column indices
            ],
            out_specs=pl.BlockSpec((1, 1), lambda i, k: (i, 0),
                                   memory_space=pltpu.MemorySpace.SMEM),
            scratch_shapes=[
                pltpu.VMEM((tm, 1), jnp.float32),   # running row max
                pltpu.VMEM((tm, 1), jnp.float32),   # running denominator
                pltpu.VMEM((tm, 1), jnp.float32),   # positive-pair count
                pltpu.VMEM((tm, 1), jnp.float32),   # positive-pair sim sum
            ],
            compiler_params=pltpu.CompilerParams(
                dimension_semantics=("parallel", "arbitrary"),
                vmem_limit_bytes=vmem_limit),
            cost_estimate=cost,
        )(features, features, lab_col, lab_row, col_idx)
    else:
        if B % tm != 0:
            raise ValueError(f'row_tile must divide batch size {B}')
        grid = (B // tm,)
        kernel = functools.partial(_supcon_resident_kernel, inv_temp=inv_temp)

        def _resident_call(single_buffer: bool):
            def resident_spec(shape, index_map):
                if single_buffer:
                    return pl.BlockSpec(shape, index_map,
                                        pipeline_mode=pl.Buffered(1))
                return pl.BlockSpec(shape, index_map)
            return pl.pallas_call(
                kernel,
                out_shape=jax.ShapeDtypeStruct((grid[0], 1), jnp.float32),
                grid=grid,
                in_specs=[
                    resident_spec((B, D), lambda i: (0, 0)),   # resident features
                    pl.BlockSpec((tm, 1), lambda i: (i, 0)),   # anchor labels tile
                    resident_spec((1, B), lambda i: (0, 0)),   # labels row (resident)
                    resident_spec((1, B), lambda i: (0, 0)),   # column idx (resident)
                ],
                out_specs=pl.BlockSpec((1, 1), lambda i: (i, 0),
                                       memory_space=pltpu.MemorySpace.SMEM),
                compiler_params=pltpu.CompilerParams(
                    dimension_semantics=("parallel",),
                    vmem_limit_bytes=vmem_limit),
                cost_estimate=cost,
            )(features, lab_col, lab_row, col_idx)

        try:
            # Single-buffer the resident constant-index inputs (saves the largest
            # VMEM allocation: the (B, D) contrast double buffer).
            partials = _resident_call(True)
        except Exception:
            # Fallback for toolchains where pl.Buffered is not accepted on a
            # top-level BlockSpec; default double buffering is still correct.
            partials = _resident_call(False)

    scale = -(float(temperature) / float(base_temperature)) / B
    return scale * jnp.sum(partials)


# --------------------------------------------------------------------------- #
# Pure-JAX reference (mirrors the PyTorch module) and self-test
# --------------------------------------------------------------------------- #

def _supcon_loss_ref(features, labels, temperature=0.07, base_temperature=0.07):
    B = features.shape[0]
    labels = labels.reshape(-1, 1)
    mask = (labels == labels.T).astype(jnp.float32)
    sim = jnp.matmul(features, features.T,
                     precision=jax.lax.Precision.HIGHEST) / temperature
    logits = sim - jnp.max(sim, axis=1, keepdims=True)
    logits_mask = 1.0 - jnp.eye(B, dtype=jnp.float32)
    mask = mask * logits_mask
    exp_logits = jnp.exp(logits) * logits_mask
    log_prob = logits - jnp.log(exp_logits.sum(1, keepdims=True) + 1e-6)
    mask_pos = mask.sum(1)
    mask_pos = jnp.where(mask_pos < 1e-6, 1.0, mask_pos)
    mean_log_prob_pos = (mask * log_prob).sum(1) / mask_pos
    loss = -(temperature / base_temperature) * mean_log_prob_pos
    return loss.mean()


if __name__ == "__main__":
    key = jax.random.PRNGKey(0)
    k1, k2, k3, k4 = jax.random.split(key, 4)

    # --- Small test: resident path (auto-selected) --------------------------
    B, D = 8, 32
    feats = jax.random.normal(k1, (B, D), dtype=jnp.float32)
    feats = feats / jnp.linalg.norm(feats, axis=1, keepdims=True)
    labels = jax.random.randint(k2, (B,), 0, 3, dtype=jnp.int32)

    loss = supcon_loss(feats, labels, temperature=0.07, base_temperature=0.07)
    loss = jax.block_until_ready(loss)
    ref = _supcon_loss_ref(feats, labels, temperature=0.07, base_temperature=0.07)
    assert jnp.allclose(loss, ref, rtol=1e-4, atol=1e-4), (loss, ref)

    # --- Column-tiled online-LSE path (used automatically for very large B) --
    B2, D2 = 256, 32
    feats2 = jax.random.normal(k3, (B2, D2), dtype=jnp.float32)
    feats2 = feats2 / jnp.linalg.norm(feats2, axis=1, keepdims=True)
    labels2 = jax.random.randint(k4, (B2,), 0, 10, dtype=jnp.int32)

    loss2 = supcon_loss(feats2, labels2, temperature=0.07, base_temperature=0.07,
                        force_tiled=True, row_tile=64, col_tile=128)
    loss2 = jax.block_until_ready(loss2)
    ref2 = _supcon_loss_ref(feats2, labels2, temperature=0.07,
                            base_temperature=0.07)
    assert jnp.allclose(loss2, ref2, rtol=1e-3, atol=1e-3), (loss2, ref2)

    print("KERNEL_OK")
</pallas_src>

<mosaic_0001>
module attributes {stable_mosaic.version = 11 : i64} {
  func.func @_supcon_resident_kernel(%arg0: i32, %arg1: memref<8x32xf32, #tpu.memory_space<vmem>>, %arg2: memref<8x1xi32, #tpu.memory_space<vmem>>, %arg3: memref<1x8xi32, #tpu.memory_space<vmem>>, %arg4: memref<1x8xi32, #tpu.memory_space<vmem>>, %arg5: memref<1x1xf32, #tpu.memory_space<smem>>) attributes {dimension_semantics = [#tpu.dimension_semantics<parallel>], iteration_bounds = array<i64: 1>, scalar_prefetch = 0 : i64, scratch_operands = 0 : i64, tpu.core_type = #tpu.core_type<tc>, window_params = [{pipeline_mode = #tpu.pipeline_mode<synchronous>, transform_indices = @transform_0, window_bounds = array<i64: 8, 32>}, {transform_indices = @transform_1, window_bounds = array<i64: 8, 1>}, {pipeline_mode = #tpu.pipeline_mode<synchronous>, transform_indices = @transform_2, window_bounds = array<i64: 1, 8>}, {pipeline_mode = #tpu.pipeline_mode<synchronous>, transform_indices = @transform_3, window_bounds = array<i64: 1, 8>}, {transform_indices = @transform_4, window_bounds = array<i64: 1, 1>}]} {
    %c0 = arith.constant 0 : index
    %c0_0 = arith.constant 0 : index
    %0 = vector.load %arg1[%c0, %c0_0] : memref<8x32xf32, #tpu.memory_space<vmem>>, vector<8x32xf32>
    %c8_i32 = arith.constant 8 : i32
    %1 = arith.muli %arg0, %c8_i32 : i32
    %2 = tpu.assume_multiple %1, 8 : i32
    %3 = arith.index_cast %2 : i32 to index
    %c0_1 = arith.constant 0 : index
    %4 = vector.load %arg1[%3, %c0_1] : memref<8x32xf32, #tpu.memory_space<vmem>>, vector<8x32xf32>
    %cst = arith.constant 14.2857141 : f32
    %5 = vector.broadcast %cst : f32 to vector<8x32xf32>
    %6 = arith.mulf %4, %5 : vector<8x32xf32>
    %cst_2 = arith.constant dense<0.000000e+00> : vector<8x8xf32>
    %7 = tpu.matmul %6, %0, %cst_2 {dimension_numbers = #tpu.dot_dimension_numbers<[1], [1], [0], [0], [0, 0, 1, 0], [], []>} : vector<8x32xf32>, vector<8x32xf32>, vector<8x8xf32> -> vector<8x8xf32>
    %8 = tpu.iota {dimensions = array<i32: 0>} : vector<8x1xi32>
    %c8_i32_3 = arith.constant 8 : i32
    %9 = arith.muli %arg0, %c8_i32_3 : i32
    %10 = vector.broadcast %9 : i32 to vector<8x1xi32>
    %11 = arith.addi %8, %10 : vector<8x1xi32>
    %c0_4 = arith.constant 0 : index
    %c0_5 = arith.constant 0 : index
    %12 = vector.load %arg4[%c0_4, %c0_5] : memref<1x8xi32, #tpu.memory_space<vmem>>, vector<1x8xi32>
    %13 = vector.broadcast %11 : vector<8x1xi32> to vector<8x8xi32>
    %14 = vector.broadcast %12 : vector<1x8xi32> to vector<8x8xi32>
    %15 = arith.cmpi ne, %13, %14 : vector<8x8xi32>
    %c0_6 = arith.constant 0 : index
    %c0_7 = arith.constant 0 : index
    %16 = vector.load %arg2[%c0_6, %c0_7] : memref<8x1xi32, #tpu.memory_space<vmem>>, vector<8x1xi32>
    %c0_8 = arith.constant 0 : index
    %c0_9 = arith.constant 0 : index
    %17 = vector.load %arg3[%c0_8, %c0_9] : memref<1x8xi32, #tpu.memory_space<vmem>>, vector<1x8xi32>
    %18 = vector.broadcast %16 : vector<8x1xi32> to vector<8x8xi32>
    %19 = vector.broadcast %17 : vector<1x8xi32> to vector<8x8xi32>
    %20 = arith.cmpi eq, %18, %19 : vector<8x8xi32>
    %21 = arith.andi %20, %15 : vector<8x8xi1>
    %cst_10 = arith.constant 1.000000e+00 : f32
    %cst_11 = arith.constant 0.000000e+00 : f32
    %22 = vector.broadcast %cst_10 : f32 to vector<8x8xf32>
    %23 = vector.broadcast %cst_11 : f32 to vector<8x8xf32>
    %24 = arith.select %21, %22, %23 : vector<8x8xi1>, vector<8x8xf32>
    %cst_12 = arith.constant dense<0.000000e+00> : vector<8xf32>
    %25 = vector.multi_reduction <add>, %24, %cst_12 [1] : vector<8x8xf32> to vector<8xf32>
    %26 = vector.shape_cast %25 : vector<8xf32> to vector<8x1xf32>
    %27 = arith.mulf %24, %7 : vector<8x8xf32>
    %cst_13 = arith.constant dense<0.000000e+00> : vector<8xf32>
    %28 = vector.multi_reduction <add>, %27, %cst_13 [1] : vector<8x8xf32> to vector<8xf32>
    %29 = vector.shape_cast %28 : vector<8xf32> to vector<8x1xf32>
    %cst_14 = arith.constant dense<0xFF800000> : vector<8xf32>
    %30 = vector.multi_reduction <maximumf>, %7, %cst_14 [1] : vector<8x8xf32> to vector<8xf32>
    %31 = vector.shape_cast %30 : vector<8xf32> to vector<8x1xf32>
    %32 = vector.broadcast %31 : vector<8x1xf32> to vector<8x8xf32>
    %33 = arith.subf %7, %32 : vector<8x8xf32>
    %34 = math.exp %33 : vector<8x8xf32>
    %cst_15 = arith.constant 0.000000e+00 : f32
    %35 = vector.broadcast %cst_15 : f32 to vector<8x8xf32>
    %36 = arith.select %15, %34, %35 : vector<8x8xi1>, vector<8x8xf32>
    %cst_16 = arith.constant dense<0.000000e+00> : vector<8xf32>
    %37 = vector.multi_reduction <add>, %36, %cst_16 [1] : vector<8x8xf32> to vector<8xf32>
    %38 = vector.shape_cast %37 : vector<8xf32> to vector<8x1xf32>
    %cst_17 = arith.constant 9.99999997E-7 : f32
    %39 = vector.broadcast %cst_17 : f32 to vector<8x1xf32>
    %40 = arith.addf %38, %39 : vector<8x1xf32>
    %41 = math.log %40 : vector<8x1xf32>
    %cst_18 = arith.constant 9.99999997E-7 : f32
    %42 = vector.broadcast %cst_18 : f32 to vector<8x1xf32>
    %43 = arith.cmpf olt, %26, %42 : vector<8x1xf32>
    %cst_19 = arith.constant 1.000000e+00 : f32
    %44 = vector.broadcast %cst_19 : f32 to vector<8x1xf32>
    %45 = arith.select %43, %44, %26 : vector<8x1xi1>, vector<8x1xf32>
    %46 = arith.addf %31, %41 : vector<8x1xf32>
    %47 = arith.mulf %26, %46 : vector<8x1xf32>
    %48 = arith.subf %29, %47 : vector<8x1xf32>
    %49 = arith.divf %48, %45 : vector<8x1xf32>
    %50 = vector.shape_cast %49 : vector<8x1xf32> to vector<1x8x1xf32>
    %cst_20 = arith.constant dense<0.000000e+00> : vector<1xf32>
    %51 = vector.multi_reduction <add>, %50, %cst_20 [1, 2] : vector<1x8x1xf32> to vector<1xf32>
    %52 = vector.shape_cast %51 : vector<1xf32> to vector<1x1x1xf32>
    %53 = vector.extract %52[0, 0, 0] : f32 from vector<1x1x1xf32>
    %c0_21 = arith.constant 0 : index
    %c0_22 = arith.constant 0 : index
    %54 = memref.load %arg5[%c0_21, %c0_22] : memref<1x1xf32, #tpu.memory_space<smem>>
    memref.store %53, %arg5[%c0_21, %c0_22] : memref<1x1xf32, #tpu.memory_space<smem>>
    return
  }
  func.func @transform_0(%arg0: i32) -> (i32, i32) {
    %c0_i32 = arith.constant 0 : i32
    %c0_i32_0 = arith.constant 0 : i32
    %c0_i32_1 = arith.constant 0 : i32
    return %c0_i32, %c0_i32_0 : i32, i32
  }
  func.func @transform_1(%arg0: i32) -> (i32, i32) {
    %c0_i32 = arith.constant 0 : i32
    %c0_i32_0 = arith.constant 0 : i32
    return %arg0, %c0_i32 : i32, i32
  }
  func.func @transform_2(%arg0: i32) -> (i32, i32) {
    %c0_i32 = arith.constant 0 : i32
    %c0_i32_0 = arith.constant 0 : i32
    %c0_i32_1 = arith.constant 0 : i32
    return %c0_i32, %c0_i32_0 : i32, i32
  }
  func.func @transform_3(%arg0: i32) -> (i32, i32) {
    %c0_i32 = arith.constant 0 : i32
    %c0_i32_0 = arith.constant 0 : i32
    %c0_i32_1 = arith.constant 0 : i32
    return %c0_i32, %c0_i32_0 : i32, i32
  }
  func.func @transform_4(%arg0: i32) -> (i32, i32) {
    %c0_i32 = arith.constant 0 : i32
    %c0_i32_0 = arith.constant 0 : i32
    return %arg0, %c0_i32 : i32, i32
  }
}

module attributes {stable_mosaic.version = 11 : i64} {
  func.func @_supcon_resident_kernel(%arg0: i32, %arg1: memref<8x32xf32, #tpu.memory_space<vmem>>, %arg2: memref<8x1xi32, #tpu.memory_space<vmem>>, %arg3: memref<1x8xi32, #tpu.memory_space<vmem>>, %arg4: memref<1x8xi32, #tpu.memory_space<vmem>>, %arg5: memref<1x1xf32, #tpu.memory_space<smem>>) attributes {dimension_semantics = [#tpu.dimension_semantics<parallel>], iteration_bounds = array<i64: 1>, scalar_prefetch = 0 : i64, scratch_operands = 0 : i64, tpu.core_type = #tpu.core_type<tc>, window_params = [{pipeline_mode = #tpu.pipeline_mode<synchronous>, transform_indices = @transform_0, window_bounds = array<i64: 8, 32>}, {transform_indices = @transform_1, window_bounds = array<i64: 8, 1>}, {pipeline_mode = #tpu.pipeline_mode<synchronous>, transform_indices = @transform_2, window_bounds = array<i64: 1, 8>}, {pipeline_mode = #tpu.pipeline_mode<synchronous>, transform_indices = @transform_3, window_bounds = array<i64: 1, 8>}, {transform_indices = @transform_4, window_bounds = array<i64: 1, 1>}]} {
    %c0 = arith.constant 0 : index
    %c0_0 = arith.constant 0 : index
    %0 = vector.load %arg1[%c0, %c0_0] : memref<8x32xf32, #tpu.memory_space<vmem>>, vector<8x32xf32>
    %c8_i32 = arith.constant 8 : i32
    %1 = arith.muli %arg0, %c8_i32 : i32
    %2 = tpu.assume_multiple %1, 8 : i32
    %3 = arith.index_cast %2 : i32 to index
    %c0_1 = arith.constant 0 : index
    %4 = vector.load %arg1[%3, %c0_1] : memref<8x32xf32, #tpu.memory_space<vmem>>, vector<8x32xf32>
    %cst = arith.constant 14.2857141 : f32
    %5 = vector.broadcast %cst : f32 to vector<8x32xf32>
    %6 = arith.mulf %4, %5 : vector<8x32xf32>
    %cst_2 = arith.constant dense<0.000000e+00> : vector<8x8xf32>
    %7 = tpu.matmul %6, %0, %cst_2 {dimension_numbers = #tpu.dot_dimension_numbers<[1], [1], [0], [0], [0, 0, 1, 0], [], []>} : vector<8x32xf32>, vector<8x32xf32>, vector<8x8xf32> -> vector<8x8xf32>
    %8 = tpu.iota {dimensions = array<i32: 0>} : vector<8x1xi32>
    %c8_i32_3 = arith.constant 8 : i32
    %9 = arith.muli %arg0, %c8_i32_3 : i32
    %10 = vector.broadcast %9 : i32 to vector<8x1xi32>
    %11 = arith.addi %8, %10 : vector<8x1xi32>
    %c0_4 = arith.constant 0 : index
    %c0_5 = arith.constant 0 : index
    %12 = vector.load %arg4[%c0_4, %c0_5] : memref<1x8xi32, #tpu.memory_space<vmem>>, vector<1x8xi32>
    %13 = vector.broadcast %11 : vector<8x1xi32> to vector<8x8xi32>
    %14 = vector.broadcast %12 : vector<1x8xi32> to vector<8x8xi32>
    %15 = arith.cmpi ne, %13, %14 : vector<8x8xi32>
    %c0_6 = arith.constant 0 : index
    %c0_7 = arith.constant 0 : index
    %16 = vector.load %arg2[%c0_6, %c0_7] : memref<8x1xi32, #tpu.memory_space<vmem>>, vector<8x1xi32>
    %c0_8 = arith.constant 0 : index
    %c0_9 = arith.constant 0 : index
    %17 = vector.load %arg3[%c0_8, %c0_9] : memref<1x8xi32, #tpu.memory_space<vmem>>, vector<1x8xi32>
    %18 = vector.broadcast %16 : vector<8x1xi32> to vector<8x8xi32>
    %19 = vector.broadcast %17 : vector<1x8xi32> to vector<8x8xi32>
    %20 = arith.cmpi eq, %18, %19 : vector<8x8xi32>
    %21 = arith.andi %20, %15 : vector<8x8xi1>
    %cst_10 = arith.constant 1.000000e+00 : f32
    %cst_11 = arith.constant 0.000000e+00 : f32
    %22 = vector.broadcast %cst_10 : f32 to vector<8x8xf32>
    %23 = vector.broadcast %cst_11 : f32 to vector<8x8xf32>
    %24 = arith.select %21, %22, %23 : vector<8x8xi1>, vector<8x8xf32>
    %cst_12 = arith.constant dense<0.000000e+00> : vector<8xf32>
    %25 = vector.multi_reduction <add>, %24, %cst_12 [1] : vector<8x8xf32> to vector<8xf32>
    %26 = vector.shape_cast %25 : vector<8xf32> to vector<8x1xf32>
    %27 = arith.mulf %24, %7 : vector<8x8xf32>
    %cst_13 = arith.constant dense<0.000000e+00> : vector<8xf32>
    %28 = vector.multi_reduction <add>, %27, %cst_13 [1] : vector<8x8xf32> to vector<8xf32>
    %29 = vector.shape_cast %28 : vector<8xf32> to vector<8x1xf32>
    %cst_14 = arith.constant dense<0xFF800000> : vector<8xf32>
    %30 = vector.multi_reduction <maximumf>, %7, %cst_14 [1] : vector<8x8xf32> to vector<8xf32>
    %31 = vector.shape_cast %30 : vector<8xf32> to vector<8x1xf32>
    %32 = vector.broadcast %31 : vector<8x1xf32> to vector<8x8xf32>
    %33 = arith.subf %7, %32 : vector<8x8xf32>
    %34 = math.exp %33 : vector<8x8xf32>
    %cst_15 = arith.constant 0.000000e+00 : f32
    %35 = vector.broadcast %cst_15 : f32 to vector<8x8xf32>
    %36 = arith.select %15, %34, %35 : vector<8x8xi1>, vector<8x8xf32>
    %cst_16 = arith.constant dense<0.000000e+00> : vector<8xf32>
    %37 = vector.multi_reduction <add>, %36, %cst_16 [1] : vector<8x8xf32> to vector<8xf32>
    %38 = vector.shape_cast %37 : vector<8xf32> to vector<8x1xf32>
    %cst_17 = arith.constant 9.99999997E-7 : f32
    %39 = vector.broadcast %cst_17 : f32 to vector<8x1xf32>
    %40 = arith.addf %38, %39 : vector<8x1xf32>
    %41 = math.log %40 : vector<8x1xf32>
    %cst_18 = arith.constant 9.99999997E-7 : f32
    %42 = vector.broadcast %cst_18 : f32 to vector<8x1xf32>
    %43 = arith.cmpf olt, %26, %42 : vector<8x1xf32>
    %cst_19 = arith.constant 1.000000e+00 : f32
    %44 = vector.broadcast %cst_19 : f32 to vector<8x1xf32>
    %45 = arith.select %43, %44, %26 : vector<8x1xi1>, vector<8x1xf32>
    %46 = arith.addf %31, %41 : vector<8x1xf32>
    %47 = arith.mulf %26, %46 : vector<8x1xf32>
    %48 = arith.subf %29, %47 : vector<8x1xf32>
    %49 = arith.divf %48, %45 : vector<8x1xf32>
    %50 = vector.shape_cast %49 : vector<8x1xf32> to vector<1x8x1xf32>
    %cst_20 = arith.constant dense<0.000000e+00> : vector<1xf32>
    %51 = vector.multi_reduction <add>, %50, %cst_20 [1, 2] : vector<1x8x1xf32> to vector<1xf32>
    %52 = vector.shape_cast %51 : vector<1xf32> to vector<1x1x1xf32>
    %53 = vector.extract %52[0, 0, 0] : f32 from vector<1x1x1xf32>
    %c0_21 = arith.constant 0 : index
    %c0_22 = arith.constant 0 : index
    %54 = memref.load %arg5[%c0_21, %c0_22] : memref<1x1xf32, #tpu.memory_space<smem>>
    memref.store %53, %arg5[%c0_21, %c0_22] : memref<1x1xf32, #tpu.memory_space<smem>>
    return
  }
  func.func @transform_0(%arg0: i32) -> (i32, i32) {
    %c0_i32 = arith.constant 0 : i32
    %c0_i32_0 = arith.constant 0 : i32
    %c0_i32_1 = arith.constant 0 : i32
    return %c0_i32, %c0_i32_0 : i32, i32
  }
  func.func @transform_1(%arg0: i32) -> (i32, i32) {
    %c0_i32 = arith.constant 0 : i32
    %c0_i32_0 = arith.constant 0 : i32
    return %arg0, %c0_i32 : i32, i32
  }
  func.func @transform_2(%arg0: i32) -> (i32, i32) {
    %c0_i32 = arith.constant 0 : i32
    %c0_i32_0 = arith.constant 0 : i32
    %c0_i32_1 = arith.constant 0 : i32
    return %c0_i32, %c0_i32_0 : i32, i32
  }
  func.func @transform_3(%arg0: i32) -> (i32, i32) {
    %c0_i32 = arith.constant 0 : i32
    %c0_i32_0 = arith.constant 0 : i32
    %c0_i32_1 = arith.constant 0 : i32
    return %c0_i32, %c0_i32_0 : i32, i32
  }
  func.func @transform_4(%arg0: i32) -> (i32, i32) {
    %c0_i32 = arith.constant 0 : i32
    %c0_i32_0 = arith.constant 0 : i32
    return %arg0, %c0_i32 : i32, i32
  }
}

</mosaic_0001>

<bundles_post_ra>
// kernel: tpu_custom_call.1
= control target key start
LH: loop header
LB: loop body
LE: loop exit
PB: predicated region body
PF: predicated region fallthrough
CT: control target
= control target key end

     0   :  { %9 = vsyncpa [#allocation3], 0  ;;  %s457_s0 = inlined_call_operand.hbm [shape: f32[8,32], index: 0, kind: input, shape index: {}]   ;;  %s458_s1 = inlined_call_operand.hbm [shape: s32[8,1], index: 1, kind: input, shape index: {}]   ;;  %s459_s2 = inlined_call_operand.hbm [shape: s32[1,8], index: 2, kind: input, shape index: {}]   ;;  %s460_s3 = inlined_call_operand.hbm [shape: s32[1,8], index: 3, kind: input, shape index: {}]   ;;  %s461_s4 = inlined_call_operand.hbm [shape: f32[1,1], index: 4, kind: output, shape index: {}]  }
   0x1   :  { %10 = vsyncpa [#allocation6], 0 }
   0x2   :  { %11 = vsyncpa [#allocation9], 0 }
   0x3   :  { %12 = vsyncpa [#allocation4], 0  ;;  %s360_s15 = smov [#allocation5]   ;;  %s361_s17 = smov [#allocation2]  }
   0x4   :  { %s29_s16 = sshll.u32 %s360_s15, 4  ;;  %s19_s18 = sshll.u32 %s361_s17, 4  ;;  %s30_s16 = int_to_ptr.vmem [resolvable:$true] %s29_s16  ;;  %s20_s18 = int_to_ptr.vmem [resolvable:$true] %s19_s18 }
   0x5   :  { %s254_s21 = scalar_lea.hbm %s458_s1, 128 }
   0x6   :  { %p255_p0 = scmp.ne.s32.totalorder %s458_s1, %s254_s21  ;;  %p258_p1 = scmp.lt.u32.totalorder %s254_s21, %s458_s1 }
   0x8   :  { %p260_p2 = pnand %p258_p1, %p255_p0 }
   0xa   :  { %263 = shalt.err (!%p260_p2)
}
   0xb   :  { %s264_s26 = scalar_lea.vmem %s30_s16, 128  ;;  %p269_p4 = scmp.lt.s32.totalorder %s30_s16, %s30_s16 }
   0xc   :  { %p265_p3 = scmp.ne.s32.totalorder %s30_s16, %s264_s26  ;;  %p270_p5 = scmp.lt.s32.totalorder %s264_s26, %s264_s26 }
   0xe   :  { %p271_p6 = por %p270_p5, %p269_p4 }
  0x10   :  { %p272_p7 = pnand %p271_p6, %p265_p3 }
  0x12   :  { %275 = shalt.err (!%p272_p7)
}
  0x13   :  { %32 = dma.hbm_to_vmem [thread:$0]  %s458_s1, 128, %s30_s16, [#allocation6]  }
  0x14   :  { %s276_s5 = scalar_lea.hbm %s457_s0, 128 }
  0x15   :  { %p277_p8 = scmp.ne.s32.totalorder %s457_s0, %s276_s5  ;;  %p280_p9 = scmp.lt.u32.totalorder %s276_s5, %s457_s0 }
  0x17   :  { %p282_p10 = pnand %p280_p9, %p277_p8 }
  0x19   :  { %285 = shalt.err (!%p282_p10)
}
  0x1a   :  { %s286_s10 = scalar_lea.vmem %s20_s18, 128  ;;  %p291_p12 = scmp.lt.s32.totalorder %s20_s18, %s20_s18 }
  0x1b   :  { %p287_p11 = scmp.ne.s32.totalorder %s20_s18, %s286_s10  ;;  %p292_p13 = scmp.lt.s32.totalorder %s286_s10, %s286_s10 }
  0x1d   :  { %p293_p0 = por %p292_p13, %p291_p12 }
  0x1f   :  { %p294_p1 = pnand %p293_p0, %p287_p11 }
  0x21   :  { %297 = shalt.err (!%p294_p1)
}
  0x22   :  { %22 = dma.hbm_to_vmem [thread:$0]  %s457_s0, 128, %s20_s18, [#allocation3]  }
  0x23   :  { %s362_s12 = smov [#allocation7]   ;;  %s363_s14 = smov [#allocation8]  }
  0x24   :  { %s39_s13 = sshll.u32 %s362_s12, 4  ;;  %s49_s15 = sshll.u32 %s363_s14, 4  ;;  %s40_s13 = int_to_ptr.vmem [resolvable:$true] %s39_s13  ;;  %s50_s15 = int_to_ptr.vmem [resolvable:$true] %s49_s15 }
  0x25   :  { %s298_s19 = scalar_lea.hbm %s459_s2, 16 }
  0x26   :  { %p299_p2 = scmp.ne.s32.totalorder %s459_s2, %s298_s19  ;;  %p302_p3 = scmp.lt.u32.totalorder %s298_s19, %s459_s2 }
  0x28   :  { %p304_p4 = pnand %p302_p3, %p299_p2 }
  0x2a   :  { %307 = shalt.err (!%p304_p4)
}
  0x2b   :  { %s308_s0 = scalar_lea.vmem %s40_s13, 16  ;;  %s312_s18 = scalar_lea.vmem %s40_s13, 32 }
  0x2c   :  { %p309_p5 = scmp.ne.s32.totalorder %s40_s13, %s308_s0  ;;  %p313_p6 = scmp.lt.s32.totalorder %s40_s13, %s40_s13 }
  0x2d   :  { %p314_p7 = scmp.lt.s32.totalorder %s312_s18, %s308_s0 }
  0x2f   :  { %p315_p8 = por %p314_p7, %p313_p6 }
  0x31   :  { %p316_p9 = pnand %p315_p8, %p309_p5 }
  0x33   :  { %319 = shalt.err (!%p316_p9)
}
  0x34   :  { %42 = dma.hbm_to_vmem [thread:$0]  %s459_s2, 16, %s40_s13, [#allocation6]  }
  0x35   :  { %s320_s28 = scalar_lea.hbm %s460_s3, 16 }
  0x36   :  { %p321_p10 = scmp.ne.s32.totalorder %s460_s3, %s320_s28  ;;  %p324_p11 = scmp.lt.u32.totalorder %s320_s28, %s460_s3 }
  0x38   :  { %p326_p12 = pnand %p324_p11, %p321_p10 }
  0x3a   :  { %329 = shalt.err (!%p326_p12)
}
  0x3b   :  { %s330_s7 = scalar_lea.vmem %s50_s15, 16  ;;  %s334_s8 = scalar_lea.vmem %s50_s15, 32 }
  0x3c   :  { %p331_p13 = scmp.ne.s32.totalorder %s50_s15, %s330_s7  ;;  %p335_p0 = scmp.lt.s32.totalorder %s50_s15, %s50_s15 }
  0x3d   :  { %p336_p1 = scmp.lt.s32.totalorder %s334_s8, %s330_s7 }
  0x3f   :  { %p337_p2 = por %p336_p1, %p335_p0 }
  0x41   :  { %p338_p3 = pnand %p337_p2, %p331_p13 }
  0x43   :  { %341 = shalt.err (!%p338_p3)
}
  0x44   :  { %52 = dma.hbm_to_vmem [thread:$0]  %s460_s3, 16, %s50_s15, [#allocation9]  }
  0x45   :  { %352 = dma.done.wait [#allocation3], 128  }
  0x46   :  { %353 = vsyncadd [#allocation3], 4294967168 }
  0x47   :  { %354 = dma.done.wait [#allocation6], 144  }
  0x48   :  { %355 = vsyncadd [#allocation6], 4294967152 }
  0x49   :  { %356 = dma.done.wait [#allocation9], 16  }
  0x4a   :  { %357 = vsyncadd [#allocation9], 4294967280  ;;  %v364_v0 = vmov 0.0   ;;  %vm365_vm0 = vmmov 0   ;;  %vm70_vm1 = vcmask 261120   ;;  %v65_v1 = vld [vmem:[#allocation2] sm:$0xff]  ;;  %v147_v11 = vlaneseq }
  0x4b   :  { %232 = vmatprep.subr.mxu0 %v364_v0  ;;  %234 = vmatprep.mubr.msk.f32.mxu0 %vm365_vm0, %v364_v0  ;;  %v69_v2 = vmul.f32 14.285714, %v65_v1  ;;  %v366_v3 = vmov 0   ;;  %vm169_vm2 = vcmask 64512   ;;  %v157_v7 = vld [vmem:[#allocation5] sm:$0xff]  ;;  %vm197_vm7 = vcmask 7168  }
  0x4c   :  { %233 = vmatpush3.xpose.msk.msra.mxu0 %vm70_vm1, %v65_v1  ;;  %247 = vset.pattern.permute.xlu0 %v366_v3  ;;  %v148_v12 = vshrl.u32 %v147_v11, 7  ;;  %v228_v13 = vld [vmem:[#allocation8] ss:$0 sm:$0xff]  ;;  %v229_v14 = vld [vmem:[#allocation7] ss:$0 sm:$0xff]  ;;  %s342_s11 = scalar_lea.hbm %s461_s4, 16 }
  0x4d   :  { %p343_p4 = scmp.ne.s32.totalorder %s461_s4, %s342_s11  ;;  %p346_p5 = scmp.lt.u32.totalorder %s342_s11, %s461_s4 }
  0x4e   :  { %vm156_vm3 = vcmp.ne.s32.totalorder %v148_v12, %v228_v13 }
  0x4f   :  { %235 = vmatmul.mubr.msk.f32.vlgmr.msra.gmra.mrb[0].mxu0 %vm70_vm1, %v69_v2  ;;  %p348_p6 = pnand %p346_p5, %p343_p4 }
 0x122   :  { %v143_v4 = vpop.f32.mrb[0].mxu0 }
 0x123   :  { %v236_v5 = vpop.f32.mrb[1].mxu0  ;;  %v177_v6 = vsel %vm169_vm2, %v143_v4, -inf }
 0x124   :  { %178 = vmax.xlane.f32.xlu0 %v177_v6 }
 0x13a   :  { %160 = vperm.xlu0 %247, %v157_v7  }
 0x1b1   :  { %v179_v8 = vpop.xlane.xlu0 %178 }
 0x1b2   :  { %v180_v9 = vsub.f32 %v143_v4, %v179_v8 }
 0x1b4   :  { %v181_v10 = vmul.f32 1.442695, %v180_v9 }
 0x1b6   :  { %248 = vpow2.f32 %v181_v10 }
 0x1b9   :  { %v161_v15 = vpop.permute.xlu0 %160 }
 0x1ba   :  { %vm166_vm4 = vcmp.eq.s32.totalorder %v161_v15, %v229_v14 }
 0x1bb   :  { %vm167_vm5 = vmand %vm166_vm4, %vm156_vm3 }
 0x1bc   :  { %v168_v19 = vsel %vm167_vm5, 1.0, %v364_v0 }
 0x1bd   :  { %v170_v20 = vsel %vm169_vm2, %v168_v19, 0.0  ;;  %v173_v21 = vmul.f32 %v168_v19, %v143_v4 }
 0x1bf   :  { %v174_v22 = vsel %vm169_vm2, %v173_v21, 0.0 }
 0x1c0   :  { %v249_v16 = vpop.eup %248 }
 0x1c1   :  { %v183_v17 = vsel %vm156_vm3, %v249_v16, 0.0 }
 0x1c2   :  { %v184_v18 = vsel %vm169_vm2, %v183_v17, 0.0 }
 0x1c3   :  { %185 = vadd.xlane.f32.xlu1 %v184_v18 }
 0x1c7   :  { %171 = vadd.xlane.f32.xlu1 %v170_v20 }
 0x1cb   :  { %175 = vadd.xlane.f32.xlu1 %v174_v22 }
 0x250   :  { %v186_v23 = vpop.xlane.xlu1 %185 }
 0x251   :  { %v187_v24 = vadd.f32 1e-06, %v186_v23 }
 0x253   :  { %250 = vlog2.f32 %v187_v24 }
 0x254   :  { %v172_v25 = vpop.xlane.xlu1 %171 }
 0x255   :  { %vm190_vm6 = vcmp.lt.f32.partialorder %v172_v25, 1e-06 }
 0x256   :  { %v191_v26 = vsel %vm190_vm6, 1.0, %v172_v25 }
 0x257   :  { %252 = vrcp.f32 %v191_v26 }
 0x258   :  { %v176_v32 = vpop.xlane.xlu1 %175 }
 0x25d   :  { %v251_v27 = vpop.eup %250 }
 0x25e   :  { %v189_v28 = vmul.f32 0.6931472, %v251_v27 }
 0x260   :  { %v192_v29 = vadd.f32 %v189_v28, %v179_v8 }
 0x261   :  { %v253_v31 = vpop.eup %252 }
 0x262   :  { %v193_v30 = vmul.f32 %v192_v29, %v172_v25 }
 0x264   :  { %v194_v33 = vsub.f32 %v176_v32, %v193_v30 }
 0x266   :  { %v196_v34 = vmul.f32 %v253_v31, %v194_v33 }
 0x268   :  { %v198_v35 = vsel %vm197_vm7, %v196_v34, 0.0 }
 0x269   :  { %199 = vadd.xlane.f32.xlu1 %v198_v35 }
 0x2f6   :  { %v200_v36 = vpop.xlane.xlu1 %199 }
 0x2f7   :  { %v201_v37 = vrot.slane %v200_v36, 4 }
 0x2f9   :  { %v202_v38 = vadd.f32 %v201_v37, %v200_v36 }
 0x2fb   :  { %v203_v39 = vrot.slane %v202_v38, 2 }
 0x2fd   :  { %v204_v40 = vadd.f32 %v203_v39, %v202_v38 }
 0x2ff   :  { %v205_v41 = vrot.slane %v204_v40, 1 }
 0x301   :  { %v206_v42 = vadd.f32 %v205_v41, %v204_v40 }
 0x303   :  { %237 = vpush %v206_v42 }
 0x334   :  { %s238_s3 = spop %237 }
 0x335   :  { %209 = sst [smem:[#allocation10]] %s238_s3 }
 0x336   :  { %351 = shalt.err (!%p348_p6)
}
 0x337   :  { %s367_s16 = smov [#allocation10]  }
 0x338   :  { %217 = dma.smem_to_hbm %s367_s16, 16, %s461_s4, [#allocation4]  }
 0x339   :  { %358 = dma.done.wait [#allocation4], 16  }
 0x33a   :  { %359 = vsyncadd [#allocation4], 4294967280 }
 0x33b   :  { %221 = sfence }
 0x33c   :  { %222 = vsyncpa [#allocation3], 1 }
 0x33d   :  { %223 = vsyncpa [#allocation6], 1 }
 0x33e   :  { %224 = vsyncpa [#allocation9], 1 }
 0x33f   :  { %225 = vsyncpa [#allocation4], 1 }

// kernel: tpu_custom_call.1
= control target key start
LH: loop header
LB: loop body
LE: loop exit
PB: predicated region body
PF: predicated region fallthrough
CT: control target
= control target key end

     0   :  { %9 = vsyncpa [#allocation3], 0  ;;  %s457_s0 = inlined_call_operand.hbm [shape: f32[8,32], index: 0, kind: input, shape index: {}]   ;;  %s458_s1 = inlined_call_operand.hbm [shape: s32[8,1], index: 1, kind: input, shape index: {}]   ;;  %s459_s2 = inlined_call_operand.hbm [shape: s32[1,8], index: 2, kind: input, shape index: {}]   ;;  %s460_s3 = inlined_call_operand.hbm [shape: s32[1,8], index: 3, kind: input, shape index: {}]   ;;  %s461_s4 = inlined_call_operand.hbm [shape: f32[1,1], index: 4, kind: output, shape index: {}]  }
   0x1   :  { %10 = vsyncpa [#allocation6], 0 }
   0x2   :  { %11 = vsyncpa [#allocation9], 0 }
   0x3   :  { %12 = vsyncpa [#allocation4], 0  ;;  %s360_s15 = smov [#allocation5]   ;;  %s361_s17 = smov [#allocation2]  }
   0x4   :  { %s29_s16 = sshll.u32 %s360_s15, 4  ;;  %s19_s18 = sshll.u32 %s361_s17, 4  ;;  %s30_s16 = int_to_ptr.vmem [resolvable:$true] %s29_s16  ;;  %s20_s18 = int_to_ptr.vmem [resolvable:$true] %s19_s18 }
   0x5   :  { %s254_s21 = scalar_lea.hbm %s458_s1, 128 }
   0x6   :  { %p255_p0 = scmp.ne.s32.totalorder %s458_s1, %s254_s21  ;;  %p258_p1 = scmp.lt.u32.totalorder %s254_s21, %s458_s1 }
   0x8   :  { %p260_p2 = pnand %p258_p1, %p255_p0 }
   0xa   :  { %263 = shalt.err (!%p260_p2)
}
   0xb   :  { %s264_s26 = scalar_lea.vmem %s30_s16, 128  ;;  %p269_p4 = scmp.lt.s32.totalorder %s30_s16, %s30_s16 }
   0xc   :  { %p265_p3 = scmp.ne.s32.totalorder %s30_s16, %s264_s26  ;;  %p270_p5 = scmp.lt.s32.totalorder %s264_s26, %s264_s26 }
   0xe   :  { %p271_p6 = por %p270_p5, %p269_p4 }
  0x10   :  { %p272_p7 = pnand %p271_p6, %p265_p3 }
  0x12   :  { %275 = shalt.err (!%p272_p7)
}
  0x13   :  { %32 = dma.hbm_to_vmem [thread:$0]  %s458_s1, 128, %s30_s16, [#allocation6]  }
  0x14   :  { %s276_s5 = scalar_lea.hbm %s457_s0, 128 }
  0x15   :  { %p277_p8 = scmp.ne.s32.totalorder %s457_s0, %s276_s5  ;;  %p280_p9 = scmp.lt.u32.totalorder %s276_s5, %s457_s0 }
  0x17   :  { %p282_p10 = pnand %p280_p9, %p277_p8 }
  0x19   :  { %285 = shalt.err (!%p282_p10)
}
  0x1a   :  { %s286_s10 = scalar_lea.vmem %s20_s18, 128  ;;  %p291_p12 = scmp.lt.s32.totalorder %s20_s18, %s20_s18 }
  0x1b   :  { %p287_p11 = scmp.ne.s32.totalorder %s20_s18, %s286_s10  ;;  %p292_p13 = scmp.lt.s32.totalorder %s286_s10, %s286_s10 }
  0x1d   :  { %p293_p0 = por %p292_p13, %p291_p12 }
  0x1f   :  { %p294_p1 = pnand %p293_p0, %p287_p11 }
  0x21   :  { %297 = shalt.err (!%p294_p1)
}
  0x22   :  { %22 = dma.hbm_to_vmem [thread:$0]  %s457_s0, 128, %s20_s18, [#allocation3]  }
  0x23   :  { %s362_s12 = smov [#allocation7]   ;;  %s363_s14 = smov [#allocation8]  }
  0x24   :  { %s39_s13 = sshll.u32 %s362_s12, 4  ;;  %s49_s15 = sshll.u32 %s363_s14, 4  ;;  %s40_s13 = int_to_ptr.vmem [resolvable:$true] %s39_s13  ;;  %s50_s15 = int_to_ptr.vmem [resolvable:$true] %s49_s15 }
  0x25   :  { %s298_s19 = scalar_lea.hbm %s459_s2, 16 }
  0x26   :  { %p299_p2 = scmp.ne.s32.totalorder %s459_s2, %s298_s19  ;;  %p302_p3 = scmp.lt.u32.totalorder %s298_s19, %s459_s2 }
  0x28   :  { %p304_p4 = pnand %p302_p3, %p299_p2 }
  0x2a   :  { %307 = shalt.err (!%p304_p4)
}
  0x2b   :  { %s308_s0 = scalar_lea.vmem %s40_s13, 16  ;;  %s312_s18 = scalar_lea.vmem %s40_s13, 32 }
  0x2c   :  { %p309_p5 = scmp.ne.s32.totalorder %s40_s13, %s308_s0  ;;  %p313_p6 = scmp.lt.s32.totalorder %s40_s13, %s40_s13 }
  0x2d   :  { %p314_p7 = scmp.lt.s32.totalorder %s312_s18, %s308_s0 }
  0x2f   :  { %p315_p8 = por %p314_p7, %p313_p6 }
  0x31   :  { %p316_p9 = pnand %p315_p8, %p309_p5 }
  0x33   :  { %319 = shalt.err (!%p316_p9)
}
  0x34   :  { %42 = dma.hbm_to_vmem [thread:$0]  %s459_s2, 16, %s40_s13, [#allocation6]  }
  0x35   :  { %s320_s28 = scalar_lea.hbm %s460_s3, 16 }
  0x36   :  { %p321_p10 = scmp.ne.s32.totalorder %s460_s3, %s320_s28  ;;  %p324_p11 = scmp.lt.u32.totalorder %s320_s28, %s460_s3 }
  0x38   :  { %p326_p12 = pnand %p324_p11, %p321_p10 }
  0x3a   :  { %329 = shalt.err (!%p326_p12)
}
  0x3b   :  { %s330_s7 = scalar_lea.vmem %s50_s15, 16  ;;  %s334_s8 = scalar_lea.vmem %s50_s15, 32 }
  0x3c   :  { %p331_p13 = scmp.ne.s32.totalorder %s50_s15, %s330_s7  ;;  %p335_p0 = scmp.lt.s32.totalorder %s50_s15, %s50_s15 }
  0x3d   :  { %p336_p1 = scmp.lt.s32.totalorder %s334_s8, %s330_s7 }
  0x3f   :  { %p337_p2 = por %p336_p1, %p335_p0 }
  0x41   :  { %p338_p3 = pnand %p337_p2, %p331_p13 }
  0x43   :  { %341 = shalt.err (!%p338_p3)
}
  0x44   :  { %52 = dma.hbm_to_vmem [thread:$0]  %s460_s3, 16, %s50_s15, [#allocation9]  }
  0x45   :  { %352 = dma.done.wait [#allocation3], 128  }
  0x46   :  { %353 = vsyncadd [#allocation3], 4294967168 }
  0x47   :  { %354 = dma.done.wait [#allocation6], 144  }
  0x48   :  { %355 = vsyncadd [#allocation6], 4294967152 }
  0x49   :  { %356 = dma.done.wait [#allocation9], 16  }
  0x4a   :  { %357 = vsyncadd [#allocation9], 4294967280  ;;  %v364_v0 = vmov 0.0   ;;  %vm365_vm0 = vmmov 0   ;;  %vm70_vm1 = vcmask 261120   ;;  %v65_v1 = vld [vmem:[#allocation2] sm:$0xff]  ;;  %v147_v11 = vlaneseq }
  0x4b   :  { %232 = vmatprep.subr.mxu0 %v364_v0  ;;  %234 = vmatprep.mubr.msk.f32.mxu0 %vm365_vm0, %v364_v0  ;;  %v69_v2 = vmul.f32 14.285714, %v65_v1  ;;  %v366_v3 = vmov 0   ;;  %vm169_vm2 = vcmask 64512   ;;  %v157_v7 = vld [vmem:[#allocation5] sm:$0xff]  ;;  %vm197_vm7 = vcmask 7168  }
  0x4c   :  { %233 = vmatpush3.xpose.msk.msra.mxu0 %vm70_vm1, %v65_v1  ;;  %247 = vset.pattern.permute.xlu0 %v366_v3  ;;  %v148_v12 = vshrl.u32 %v147_v11, 7  ;;  %v228_v13 = vld [vmem:[#allocation8] ss:$0 sm:$0xff]  ;;  %v229_v14 = vld [vmem:[#allocation7] ss:$0 sm:$0xff]  ;;  %s342_s11 = scalar_lea.hbm %s461_s4, 16 }
  0x4d   :  { %p343_p4 = scmp.ne.s32.totalorder %s461_s4, %s342_s11  ;;  %p346_p5 = scmp.lt.u32.totalorder %s342_s11, %s461_s4 }
  0x4e   :  { %vm156_vm3 = vcmp.ne.s32.totalorder %v148_v12, %v228_v13 }
  0x4f   :  { %235 = vmatmul.mubr.msk.f32.vlgmr.msra.gmra.mrb[0].mxu0 %vm70_vm1, %v69_v2  ;;  %p348_p6 = pnand %p346_p5, %p343_p4 }
 0x122   :  { %v143_v4 = vpop.f32.mrb[0].mxu0 }
 0x123   :  { %v236_v5 = vpop.f32.mrb[1].mxu0  ;;  %v177_v6 = vsel %vm169_vm2, %v143_v4, -inf }
 0x124   :  { %178 = vmax.xlane.f32.xlu0 %v177_v6 }
 0x13a   :  { %160 = vperm.xlu0 %247, %v157_v7  }
 0x1b1   :  { %v179_v8 = vpop.xlane.xlu0 %178 }
 0x1b2   :  { %v180_v9 = vsub.f32 %v143_v4, %v179_v8 }
 0x1b4   :  { %v181_v10 = vmul.f32 1.442695, %v180_v9 }
 0x1b6   :  { %248 = vpow2.f32 %v181_v10 }
 0x1b9   :  { %v161_v15 = vpop.permute.xlu0 %160 }
 0x1ba   :  { %vm166_vm4 = vcmp.eq.s32.totalorder %v161_v15, %v229_v14 }
 0x1bb   :  { %vm167_vm5 = vmand %vm166_vm4, %vm156_vm3 }
 0x1bc   :  { %v168_v19 = vsel %vm167_vm5, 1.0, %v364_v0 }
 0x1bd   :  { %v170_v20 = vsel %vm169_vm2, %v168_v19, 0.0  ;;  %v173_v21 = vmul.f32 %v168_v19, %v143_v4 }
 0x1bf   :  { %v174_v22 = vsel %vm169_vm2, %v173_v21, 0.0 }
 0x1c0   :  { %v249_v16 = vpop.eup %248 }
 0x1c1   :  { %v183_v17 = vsel %vm156_vm3, %v249_v16, 0.0 }
 0x1c2   :  { %v184_v18 = vsel %vm169_vm2, %v183_v17, 0.0 }
 0x1c3   :  { %185 = vadd.xlane.f32.xlu1 %v184_v18 }
 0x1c7   :  { %171 = vadd.xlane.f32.xlu1 %v170_v20 }
 0x1cb   :  { %175 = vadd.xlane.f32.xlu1 %v174_v22 }
 0x250   :  { %v186_v23 = vpop.xlane.xlu1 %185 }
 0x251   :  { %v187_v24 = vadd.f32 1e-06, %v186_v23 }
 0x253   :  { %250 = vlog2.f32 %v187_v24 }
 0x254   :  { %v172_v25 = vpop.xlane.xlu1 %171 }
 0x255   :  { %vm190_vm6 = vcmp.lt.f32.partialorder %v172_v25, 1e-06 }
 0x256   :  { %v191_v26 = vsel %vm190_vm6, 1.0, %v172_v25 }
 0x257   :  { %252 = vrcp.f32 %v191_v26 }
 0x258   :  { %v176_v32 = vpop.xlane.xlu1 %175 }
 0x25d   :  { %v251_v27 = vpop.eup %250 }
 0x25e   :  { %v189_v28 = vmul.f32 0.6931472, %v251_v27 }
 0x260   :  { %v192_v29 = vadd.f32 %v189_v28, %v179_v8 }
 0x261   :  { %v253_v31 = vpop.eup %252 }
 0x262   :  { %v193_v30 = vmul.f32 %v192_v29, %v172_v25 }
 0x264   :  { %v194_v33 = vsub.f32 %v176_v32, %v193_v30 }
 0x266   :  { %v196_v34 = vmul.f32 %v253_v31, %v194_v33 }
 0x268   :  { %v198_v35 = vsel %vm197_vm7, %v196_v34, 0.0 }
 0x269   :  { %199 = vadd.xlane.f32.xlu1 %v198_v35 }
 0x2f6   :  { %v200_v36 = vpop.xlane.xlu1 %199 }
 0x2f7   :  { %v201_v37 = vrot.slane %v200_v36, 4 }
 0x2f9   :  { %v202_v38 = vadd.f32 %v201_v37, %v200_v36 }
 0x2fb   :  { %v203_v39 = vrot.slane %v202_v38, 2 }
 0x2fd   :  { %v204_v40 = vadd.f32 %v203_v39, %v202_v38 }
 0x2ff   :  { %v205_v41 = vrot.slane %v204_v40, 1 }
 0x301   :  { %v206_v42 = vadd.f32 %v205_v41, %v204_v40 }
 0x303   :  { %237 = vpush %v206_v42 }
 0x334   :  { %s238_s3 = spop %237 }
 0x335   :  { %209 = sst [smem:[#allocation10]] %s238_s3 }
 0x336   :  { %351 = shalt.err (!%p348_p6)
}
 0x337   :  { %s367_s16 = smov [#allocation10]  }
 0x338   :  { %217 = dma.smem_to_hbm %s367_s16, 16, %s461_s4, [#allocation4]  }
 0x339   :  { %358 = dma.done.wait [#allocation4], 16  }
 0x33a   :  { %359 = vsyncadd [#allocation4], 4294967280 }
 0x33b   :  { %221 = sfence }
 0x33c   :  { %222 = vsyncpa [#allocation3], 1 }
 0x33d   :  { %223 = vsyncpa [#allocation6], 1 }
 0x33e   :  { %224 = vsyncpa [#allocation9], 1 }
 0x33f   :  { %225 = vsyncpa [#allocation4], 1 }

</bundles_post_ra>
